<compile_context>
chip_gen: v6e
topology: v6e:2x2x1
jax: 0.10.0
libtpu: 0.0.40
codegen_flags: <defaults>
</compile_context>

<pallas_src>
import functools

import jax
import jax.numpy as jnp
from jax.experimental import pallas as pl
from jax.experimental.pallas import tpu as pltpu

NEG_SLOPE = 0.01          # torch.nn.LeakyReLU default
H = 128                   # lane-dense padded hidden width
OUT_DIM = 8               # real output width of fcLast
N_HIDDEN = 4              # fc2..fc5 (the four identical 15x15 layers)


def _leaky_relu(x):
    return jnp.where(x > 0, x, NEG_SLOPE * x)


def mlp_kernel(x_ref, w1_ref, wh_ref, wl_ref, b_ref, o_ref):
    # x_ref: (tb, d) bf16   w1_ref: (d, H) bf16   wh_ref: (4, H, H) bf16
    # wl_ref: (H, H) bf16   b_ref: (6, H) f32     o_ref: (tb, OUT_DIM) f32
    tb = x_ref.shape[0]
    half = tb // 2

    def layer(h, w, b_row):
        z = jnp.dot(h.astype(jnp.bfloat16), w,
                    preferred_element_type=jnp.float32)
        z = z + b_ref[b_row:b_row + 1, :]
        return _leaky_relu(z)

    # Two independent half-batch chains, interleaved statically so the
    # scheduler can overlap MXU work of one half with the drain/VPU of the
    # other (biggest effect on v5e/v6e sequential MXU result FIFO).
    ha = x_ref[:half, :]
    hb = x_ref[half:, :]

    ha = layer(ha, w1_ref[...], 0)
    hb = layer(hb, w1_ref[...], 0)
    for k in range(N_HIDDEN):           # static unroll over resident weights
        wk = wh_ref[k]
        ha = layer(ha, wk, k + 1)
        hb = layer(hb, wk, k + 1)

    # Last layer: no activation.  Padded columns 8..127 are exact zeros.
    b_last = b_ref[N_HIDDEN + 1:N_HIDDEN + 2, :]
    za = jnp.dot(ha.astype(jnp.bfloat16), wl_ref[...],
                 preferred_element_type=jnp.float32) + b_last
    zb = jnp.dot(hb.astype(jnp.bfloat16), wl_ref[...],
                 preferred_element_type=jnp.float32) + b_last

    # Narrow store: only the 8 real output columns go back to HBM.
    o_ref[:half, :] = za[:, :OUT_DIM].astype(o_ref.dtype)
    o_ref[half:, :] = zb[:, :OUT_DIM].astype(o_ref.dtype)


def _pack_params(params, d):
    """params: 6 pairs (W (fan_in, fan_out), b (1, fan_out)).
    Zero-pads to lane-dense width H and consolidates into 4 slabs:
    w1 (d,H) bf16, wh (4,H,H) bf16, w_last (H,H) bf16, biases (6,H) f32.
    Zero padding is exact: padded activation columns stay 0 through
    LeakyReLU, and 0-valued weight rows/cols contribute nothing."""
    def pad_w(w, rows, cols):
        w = w.astype(jnp.float32)
        w = jnp.pad(w, ((0, rows - w.shape[0]), (0, cols - w.shape[1])))
        return w.astype(jnp.bfloat16)

    def pad_b(b, cols):
        b = b.reshape(-1).astype(jnp.float32)
        return jnp.pad(b, (0, cols - b.shape[0]))

    w1 = pad_w(params[0][0], d, H)
    wh = jnp.stack([pad_w(params[i][0], H, H) for i in range(1, 1 + N_HIDDEN)])
    wl = pad_w(params[-1][0], H, H)
    b = jnp.stack([pad_b(p[1], H) for p in params])
    return w1, wh, wl, b


@functools.partial(jax.jit, static_argnames=("block_b",))
def net_forward(x, params, block_b=2048):
    """x: (B, d) float32; params: list of 6 (W (in,out), b (1,out)) pairs."""
    B, d = x.shape
    w1, wh, wl, b = _pack_params(params, d)

    # bf16 x halves the streamed input bytes; matmul accumulates in f32.
    x = x.astype(jnp.bfloat16)

    # Batch tile: multiple of 16 (two 8-aligned halves), capped at block_b.
    tb = min(block_b, max(16, ((B + 15) // 16) * 16))
    tb = max(16, (tb // 16) * 16)
    Bp = ((B + tb - 1) // tb) * tb
    if Bp != B:
        x = jnp.pad(x, ((0, Bp - B), (0, 0)))

    out = pl.pallas_call(
        mlp_kernel,
        out_shape=jax.ShapeDtypeStruct((Bp, OUT_DIM), jnp.float32),
        grid=(Bp // tb,),
        in_specs=[
            pl.BlockSpec((tb, d), lambda i: (i, 0)),               # streamed x
            pl.BlockSpec((d, H), lambda i: (0, 0)),                # resident w1
            pl.BlockSpec((N_HIDDEN, H, H), lambda i: (0, 0, 0)),   # resident hidden W
            pl.BlockSpec((H, H), lambda i: (0, 0)),                # resident w_last
            pl.BlockSpec((N_HIDDEN + 2, H), lambda i: (0, 0)),     # resident biases
        ],
        out_specs=pl.BlockSpec((tb, OUT_DIM), lambda i: (i, 0)),   # narrow out
        compiler_params=pltpu.CompilerParams(
            dimension_semantics=("parallel",),   # shard batch grid over TCs (v7x)
        ),
    )(x, w1, wh, wl, b)

    return out[:B]


def init_params(key, d):
    """Deterministic init matching the PyTorch layer shapes.
    nn.Linear(i, o) has weight (o, i), bias (o,); we store W transposed
    as (i, o) and bias as (1, o)."""
    dims = [(d, 15), (15, 15), (15, 15), (15, 15), (15, 15), (15, OUT_DIM)]
    params = []
    for fan_in, fan_out in dims:
        key, kw, kb = jax.random.split(key, 3)
        bound = 1.0 / jnp.sqrt(jnp.float32(fan_in))
        w = jax.random.uniform(kw, (fan_in, fan_out), jnp.float32, -bound, bound)
        bb = jax.random.uniform(kb, (1, fan_out), jnp.float32, -bound, bound)
        params.append((w, bb))
    return params


def net_forward_ref(x, params):
    """Reference with the same numerics as the kernel: bf16 matmul operands,
    f32 accumulation, f32 bias add / LeakyReLU."""
    h = x.astype(jnp.float32)
    for i, (w, b) in enumerate(params):
        h = jnp.dot(h.astype(jnp.bfloat16), w.astype(jnp.bfloat16),
                    preferred_element_type=jnp.float32) + b.reshape(1, -1)
        if i < len(params) - 1:
            h = jnp.where(h > 0, h, NEG_SLOPE * h)
    return h


if __name__ == "__main__":
    d = 32
    key = jax.random.PRNGKey(0)
    key, kx = jax.random.split(key)
    params = init_params(key, d)

    # Small shape matching the module spec.
    B = 8
    x = jax.random.normal(kx, (B, d), jnp.float32)
    out = net_forward(x, params)
    jax.block_until_ready(out)
    ref = net_forward_ref(x, params)
    assert out.shape == (B, OUT_DIM), out.shape
    assert jnp.allclose(out, ref, atol=2e-2, rtol=2e-2), "mismatch vs reference (B=8)"

    # Larger batch to exercise the multi-step grid + batch padding path.
    key, kx2 = jax.random.split(key)
    B2 = 1000
    x2 = jax.random.normal(kx2, (B2, d), jnp.float32)
    out2 = net_forward(x2, params, block_b=256)
    jax.block_until_ready(out2)
    ref2 = net_forward_ref(x2, params)
    assert out2.shape == (B2, OUT_DIM), out2.shape
    assert jnp.allclose(out2, ref2, atol=2e-2, rtol=2e-2), "mismatch vs reference (B=1000)"

    print("KERNEL_OK")
</pallas_src>

<mosaic_0001>
module attributes {stable_mosaic.version = 11 : i64} {
  func.func @mlp_kernel(%arg0: i32, %arg1: memref<16x32xbf16, #tpu.memory_space<vmem>>, %arg2: memref<32x128xbf16, #tpu.memory_space<vmem>>, %arg3: memref<4x128x128xbf16, #tpu.memory_space<vmem>>, %arg4: memref<128x128xbf16, #tpu.memory_space<vmem>>, %arg5: memref<6x128xf32, #tpu.memory_space<vmem>>, %arg6: memref<16x8xf32, #tpu.memory_space<vmem>>) attributes {dimension_semantics = [#tpu.dimension_semantics<parallel>], iteration_bounds = array<i64: 1>, scalar_prefetch = 0 : i64, scratch_operands = 0 : i64, tpu.core_type = #tpu.core_type<tc>, window_params = [{transform_indices = @transform_0, window_bounds = array<i64: 16, 32>}, {pipeline_mode = #tpu.pipeline_mode<synchronous>, transform_indices = @transform_1, window_bounds = array<i64: 32, 128>}, {pipeline_mode = #tpu.pipeline_mode<synchronous>, transform_indices = @transform_2, window_bounds = array<i64: 4, 128, 128>}, {pipeline_mode = #tpu.pipeline_mode<synchronous>, transform_indices = @transform_3, window_bounds = array<i64: 128, 128>}, {pipeline_mode = #tpu.pipeline_mode<synchronous>, transform_indices = @transform_4, window_bounds = array<i64: 6, 128>}, {transform_indices = @transform_5, window_bounds = array<i64: 16, 8>}]} {
    %c0 = arith.constant 0 : index
    %c0_0 = arith.constant 0 : index
    %0 = vector.load %arg1[%c0, %c0_0] : memref<16x32xbf16, #tpu.memory_space<vmem>>, vector<8x32xbf16>
    %c8 = arith.constant 8 : index
    %c0_1 = arith.constant 0 : index
    %1 = vector.load %arg1[%c8, %c0_1] : memref<16x32xbf16, #tpu.memory_space<vmem>>, vector<8x32xbf16>
    %c0_2 = arith.constant 0 : index
    %c0_3 = arith.constant 0 : index
    %2 = vector.load %arg2[%c0_2, %c0_3] : memref<32x128xbf16, #tpu.memory_space<vmem>>, vector<32x128xbf16>
    %cst = arith.constant dense<0.000000e+00> : vector<8x128xf32>
    %3 = tpu.matmul %0, %2, %cst {dimension_numbers = #tpu.dot_dimension_numbers<[1], [0], [0], [1], [0, 0, 1, 1], [], []>} : vector<8x32xbf16>, vector<32x128xbf16>, vector<8x128xf32> -> vector<8x128xf32>
    %c0_4 = arith.constant 0 : index
    %c0_5 = arith.constant 0 : index
    %4 = vector.load %arg5[%c0_4, %c0_5] : memref<6x128xf32, #tpu.memory_space<vmem>>, vector<1x128xf32>
    %5 = vector.broadcast %4 : vector<1x128xf32> to vector<8x128xf32>
    %6 = arith.addf %3, %5 : vector<8x128xf32>
    %cst_6 = arith.constant 0.000000e+00 : f32
    %7 = vector.broadcast %cst_6 : f32 to vector<8x128xf32>
    %8 = arith.cmpf ogt, %6, %7 : vector<8x128xf32>
    %cst_7 = arith.constant 0.00999999977 : f32
    %9 = vector.broadcast %cst_7 : f32 to vector<8x128xf32>
    %10 = arith.mulf %9, %6 : vector<8x128xf32>
    %11 = arith.select %8, %6, %10 : vector<8x128xi1>, vector<8x128xf32>
    %c0_8 = arith.constant 0 : index
    %c0_9 = arith.constant 0 : index
    %12 = vector.load %arg2[%c0_8, %c0_9] : memref<32x128xbf16, #tpu.memory_space<vmem>>, vector<32x128xbf16>
    %cst_10 = arith.constant dense<0.000000e+00> : vector<8x128xf32>
    %13 = tpu.matmul %1, %12, %cst_10 {dimension_numbers = #tpu.dot_dimension_numbers<[1], [0], [0], [1], [0, 0, 1, 1], [], []>} : vector<8x32xbf16>, vector<32x128xbf16>, vector<8x128xf32> -> vector<8x128xf32>
    %c0_11 = arith.constant 0 : index
    %c0_12 = arith.constant 0 : index
    %14 = vector.load %arg5[%c0_11, %c0_12] : memref<6x128xf32, #tpu.memory_space<vmem>>, vector<1x128xf32>
    %15 = vector.broadcast %14 : vector<1x128xf32> to vector<8x128xf32>
    %16 = arith.addf %13, %15 : vector<8x128xf32>
    %cst_13 = arith.constant 0.000000e+00 : f32
    %17 = vector.broadcast %cst_13 : f32 to vector<8x128xf32>
    %18 = arith.cmpf ogt, %16, %17 : vector<8x128xf32>
    %cst_14 = arith.constant 0.00999999977 : f32
    %19 = vector.broadcast %cst_14 : f32 to vector<8x128xf32>
    %20 = arith.mulf %19, %16 : vector<8x128xf32>
    %21 = arith.select %18, %16, %20 : vector<8x128xi1>, vector<8x128xf32>
    %c0_15 = arith.constant 0 : index
    %c0_16 = arith.constant 0 : index
    %c0_17 = arith.constant 0 : index
    %22 = vector.load %arg3[%c0_15, %c0_16, %c0_17] : memref<4x128x128xbf16, #tpu.memory_space<vmem>>, vector<1x128x128xbf16>
    %23 = vector.shape_cast %22 : vector<1x128x128xbf16> to vector<128x128xbf16>
    %24 = arith.truncf %11 : vector<8x128xf32> to vector<8x128xbf16>
    %cst_18 = arith.constant dense<0.000000e+00> : vector<8x128xf32>
    %25 = tpu.matmul %24, %23, %cst_18 {dimension_numbers = #tpu.dot_dimension_numbers<[1], [0], [0], [1], [0, 0, 1, 1], [], []>} : vector<8x128xbf16>, vector<128x128xbf16>, vector<8x128xf32> -> vector<8x128xf32>
    %c1 = arith.constant 1 : index
    %c0_19 = arith.constant 0 : index
    %26 = vector.load %arg5[%c1, %c0_19] : memref<6x128xf32, #tpu.memory_space<vmem>>, vector<1x128xf32>
    %27 = vector.broadcast %26 : vector<1x128xf32> to vector<8x128xf32>
    %28 = arith.addf %25, %27 : vector<8x128xf32>
    %cst_20 = arith.constant 0.000000e+00 : f32
    %29 = vector.broadcast %cst_20 : f32 to vector<8x128xf32>
    %30 = arith.cmpf ogt, %28, %29 : vector<8x128xf32>
    %cst_21 = arith.constant 0.00999999977 : f32
    %31 = vector.broadcast %cst_21 : f32 to vector<8x128xf32>
    %32 = arith.mulf %31, %28 : vector<8x128xf32>
    %33 = arith.select %30, %28, %32 : vector<8x128xi1>, vector<8x128xf32>
    %34 = arith.truncf %21 : vector<8x128xf32> to vector<8x128xbf16>
    %cst_22 = arith.constant dense<0.000000e+00> : vector<8x128xf32>
    %35 = tpu.matmul %34, %23, %cst_22 {dimension_numbers = #tpu.dot_dimension_numbers<[1], [0], [0], [1], [0, 0, 1, 1], [], []>} : vector<8x128xbf16>, vector<128x128xbf16>, vector<8x128xf32> -> vector<8x128xf32>
    %c1_23 = arith.constant 1 : index
    %c0_24 = arith.constant 0 : index
    %36 = vector.load %arg5[%c1_23, %c0_24] : memref<6x128xf32, #tpu.memory_space<vmem>>, vector<1x128xf32>
    %37 = vector.broadcast %36 : vector<1x128xf32> to vector<8x128xf32>
    %38 = arith.addf %35, %37 : vector<8x128xf32>
    %cst_25 = arith.constant 0.000000e+00 : f32
    %39 = vector.broadcast %cst_25 : f32 to vector<8x128xf32>
    %40 = arith.cmpf ogt, %38, %39 : vector<8x128xf32>
    %cst_26 = arith.constant 0.00999999977 : f32
    %41 = vector.broadcast %cst_26 : f32 to vector<8x128xf32>
    %42 = arith.mulf %41, %38 : vector<8x128xf32>
    %43 = arith.select %40, %38, %42 : vector<8x128xi1>, vector<8x128xf32>
    %c1_27 = arith.constant 1 : index
    %c0_28 = arith.constant 0 : index
    %c0_29 = arith.constant 0 : index
    %44 = vector.load %arg3[%c1_27, %c0_28, %c0_29] : memref<4x128x128xbf16, #tpu.memory_space<vmem>>, vector<1x128x128xbf16>
    %45 = vector.shape_cast %44 : vector<1x128x128xbf16> to vector<128x128xbf16>
    %46 = arith.truncf %33 : vector<8x128xf32> to vector<8x128xbf16>
    %cst_30 = arith.constant dense<0.000000e+00> : vector<8x128xf32>
    %47 = tpu.matmul %46, %45, %cst_30 {dimension_numbers = #tpu.dot_dimension_numbers<[1], [0], [0], [1], [0, 0, 1, 1], [], []>} : vector<8x128xbf16>, vector<128x128xbf16>, vector<8x128xf32> -> vector<8x128xf32>
    %c2 = arith.constant 2 : index
    %c0_31 = arith.constant 0 : index
    %48 = vector.load %arg5[%c2, %c0_31] : memref<6x128xf32, #tpu.memory_space<vmem>>, vector<1x128xf32>
    %49 = vector.broadcast %48 : vector<1x128xf32> to vector<8x128xf32>
    %50 = arith.addf %47, %49 : vector<8x128xf32>
    %cst_32 = arith.constant 0.000000e+00 : f32
    %51 = vector.broadcast %cst_32 : f32 to vector<8x128xf32>
    %52 = arith.cmpf ogt, %50, %51 : vector<8x128xf32>
    %cst_33 = arith.constant 0.00999999977 : f32
    %53 = vector.broadcast %cst_33 : f32 to vector<8x128xf32>
    %54 = arith.mulf %53, %50 : vector<8x128xf32>
    %55 = arith.select %52, %50, %54 : vector<8x128xi1>, vector<8x128xf32>
    %56 = arith.truncf %43 : vector<8x128xf32> to vector<8x128xbf16>
    %cst_34 = arith.constant dense<0.000000e+00> : vector<8x128xf32>
    %57 = tpu.matmul %56, %45, %cst_34 {dimension_numbers = #tpu.dot_dimension_numbers<[1], [0], [0], [1], [0, 0, 1, 1], [], []>} : vector<8x128xbf16>, vector<128x128xbf16>, vector<8x128xf32> -> vector<8x128xf32>
    %c2_35 = arith.constant 2 : index
    %c0_36 = arith.constant 0 : index
    %58 = vector.load %arg5[%c2_35, %c0_36] : memref<6x128xf32, #tpu.memory_space<vmem>>, vector<1x128xf32>
    %59 = vector.broadcast %58 : vector<1x128xf32> to vector<8x128xf32>
    %60 = arith.addf %57, %59 : vector<8x128xf32>
    %cst_37 = arith.constant 0.000000e+00 : f32
    %61 = vector.broadcast %cst_37 : f32 to vector<8x128xf32>
    %62 = arith.cmpf ogt, %60, %61 : vector<8x128xf32>
    %cst_38 = arith.constant 0.00999999977 : f32
    %63 = vector.broadcast %cst_38 : f32 to vector<8x128xf32>
    %64 = arith.mulf %63, %60 : vector<8x128xf32>
    %65 = arith.select %62, %60, %64 : vector<8x128xi1>, vector<8x128xf32>
    %c2_39 = arith.constant 2 : index
    %c0_40 = arith.constant 0 : index
    %c0_41 = arith.constant 0 : index
    %66 = vector.load %arg3[%c2_39, %c0_40, %c0_41] : memref<4x128x128xbf16, #tpu.memory_space<vmem>>, vector<1x128x128xbf16>
    %67 = vector.shape_cast %66 : vector<1x128x128xbf16> to vector<128x128xbf16>
    %68 = arith.truncf %55 : vector<8x128xf32> to vector<8x128xbf16>
    %cst_42 = arith.constant dense<0.000000e+00> : vector<8x128xf32>
    %69 = tpu.matmul %68, %67, %cst_42 {dimension_numbers = #tpu.dot_dimension_numbers<[1], [0], [0], [1], [0, 0, 1, 1], [], []>} : vector<8x128xbf16>, vector<128x128xbf16>, vector<8x128xf32> -> vector<8x128xf32>
    %c3 = arith.constant 3 : index
    %c0_43 = arith.constant 0 : index
    %70 = vector.load %arg5[%c3, %c0_43] : memref<6x128xf32, #tpu.memory_space<vmem>>, vector<1x128xf32>
    %71 = vector.broadcast %70 : vector<1x128xf32> to vector<8x128xf32>
    %72 = arith.addf %69, %71 : vector<8x128xf32>
    %cst_44 = arith.constant 0.000000e+00 : f32
    %73 = vector.broadcast %cst_44 : f32 to vector<8x128xf32>
    %74 = arith.cmpf ogt, %72, %73 : vector<8x128xf32>
    %cst_45 = arith.constant 0.00999999977 : f32
    %75 = vector.broadcast %cst_45 : f32 to vector<8x128xf32>
    %76 = arith.mulf %75, %72 : vector<8x128xf32>
    %77 = arith.select %74, %72, %76 : vector<8x128xi1>, vector<8x128xf32>
    %78 = arith.truncf %65 : vector<8x128xf32> to vector<8x128xbf16>
    %cst_46 = arith.constant dense<0.000000e+00> : vector<8x128xf32>
    %79 = tpu.matmul %78, %67, %cst_46 {dimension_numbers = #tpu.dot_dimension_numbers<[1], [0], [0], [1], [0, 0, 1, 1], [], []>} : vector<8x128xbf16>, vector<128x128xbf16>, vector<8x128xf32> -> vector<8x128xf32>
    %c3_47 = arith.constant 3 : index
    %c0_48 = arith.constant 0 : index
    %80 = vector.load %arg5[%c3_47, %c0_48] : memref<6x128xf32, #tpu.memory_space<vmem>>, vector<1x128xf32>
    %81 = vector.broadcast %80 : vector<1x128xf32> to vector<8x128xf32>
    %82 = arith.addf %79, %81 : vector<8x128xf32>
    %cst_49 = arith.constant 0.000000e+00 : f32
    %83 = vector.broadcast %cst_49 : f32 to vector<8x128xf32>
    %84 = arith.cmpf ogt, %82, %83 : vector<8x128xf32>
    %cst_50 = arith.constant 0.00999999977 : f32
    %85 = vector.broadcast %cst_50 : f32 to vector<8x128xf32>
    %86 = arith.mulf %85, %82 : vector<8x128xf32>
    %87 = arith.select %84, %82, %86 : vector<8x128xi1>, vector<8x128xf32>
    %c3_51 = arith.constant 3 : index
    %c0_52 = arith.constant 0 : index
    %c0_53 = arith.constant 0 : index
    %88 = vector.load %arg3[%c3_51, %c0_52, %c0_53] : memref<4x128x128xbf16, #tpu.memory_space<vmem>>, vector<1x128x128xbf16>
    %89 = vector.shape_cast %88 : vector<1x128x128xbf16> to vector<128x128xbf16>
    %90 = arith.truncf %77 : vector<8x128xf32> to vector<8x128xbf16>
    %cst_54 = arith.constant dense<0.000000e+00> : vector<8x128xf32>
    %91 = tpu.matmul %90, %89, %cst_54 {dimension_numbers = #tpu.dot_dimension_numbers<[1], [0], [0], [1], [0, 0, 1, 1], [], []>} : vector<8x128xbf16>, vector<128x128xbf16>, vector<8x128xf32> -> vector<8x128xf32>
    %c4 = arith.constant 4 : index
    %c0_55 = arith.constant 0 : index
    %92 = vector.load %arg5[%c4, %c0_55] : memref<6x128xf32, #tpu.memory_space<vmem>>, vector<1x128xf32>
    %93 = vector.broadcast %92 : vector<1x128xf32> to vector<8x128xf32>
    %94 = arith.addf %91, %93 : vector<8x128xf32>
    %cst_56 = arith.constant 0.000000e+00 : f32
    %95 = vector.broadcast %cst_56 : f32 to vector<8x128xf32>
    %96 = arith.cmpf ogt, %94, %95 : vector<8x128xf32>
    %cst_57 = arith.constant 0.00999999977 : f32
    %97 = vector.broadcast %cst_57 : f32 to vector<8x128xf32>
    %98 = arith.mulf %97, %94 : vector<8x128xf32>
    %99 = arith.select %96, %94, %98 : vector<8x128xi1>, vector<8x128xf32>
    %100 = arith.truncf %87 : vector<8x128xf32> to vector<8x128xbf16>
    %cst_58 = arith.constant dense<0.000000e+00> : vector<8x128xf32>
    %101 = tpu.matmul %100, %89, %cst_58 {dimension_numbers = #tpu.dot_dimension_numbers<[1], [0], [0], [1], [0, 0, 1, 1], [], []>} : vector<8x128xbf16>, vector<128x128xbf16>, vector<8x128xf32> -> vector<8x128xf32>
    %c4_59 = arith.constant 4 : index
    %c0_60 = arith.constant 0 : index
    %102 = vector.load %arg5[%c4_59, %c0_60] : memref<6x128xf32, #tpu.memory_space<vmem>>, vector<1x128xf32>
    %103 = vector.broadcast %102 : vector<1x128xf32> to vector<8x128xf32>
    %104 = arith.addf %101, %103 : vector<8x128xf32>
    %cst_61 = arith.constant 0.000000e+00 : f32
    %105 = vector.broadcast %cst_61 : f32 to vector<8x128xf32>
    %106 = arith.cmpf ogt, %104, %105 : vector<8x128xf32>
    %cst_62 = arith.constant 0.00999999977 : f32
    %107 = vector.broadcast %cst_62 : f32 to vector<8x128xf32>
    %108 = arith.mulf %107, %104 : vector<8x128xf32>
    %109 = arith.select %106, %104, %108 : vector<8x128xi1>, vector<8x128xf32>
    %c5 = arith.constant 5 : index
    %c0_63 = arith.constant 0 : index
    %110 = vector.load %arg5[%c5, %c0_63] : memref<6x128xf32, #tpu.memory_space<vmem>>, vector<1x128xf32>
    %111 = arith.truncf %99 : vector<8x128xf32> to vector<8x128xbf16>
    %c0_64 = arith.constant 0 : index
    %c0_65 = arith.constant 0 : index
    %112 = vector.load %arg4[%c0_64, %c0_65] : memref<128x128xbf16, #tpu.memory_space<vmem>>, vector<128x128xbf16>
    %cst_66 = arith.constant dense<0.000000e+00> : vector<8x128xf32>
    %113 = tpu.matmul %111, %112, %cst_66 {dimension_numbers = #tpu.dot_dimension_numbers<[1], [0], [0], [1], [0, 0, 1, 1], [], []>} : vector<8x128xbf16>, vector<128x128xbf16>, vector<8x128xf32> -> vector<8x128xf32>
    %114 = vector.broadcast %110 : vector<1x128xf32> to vector<8x128xf32>
    %115 = arith.addf %113, %114 : vector<8x128xf32>
    %116 = arith.truncf %109 : vector<8x128xf32> to vector<8x128xbf16>
    %c0_67 = arith.constant 0 : index
    %c0_68 = arith.constant 0 : index
    %117 = vector.load %arg4[%c0_67, %c0_68] : memref<128x128xbf16, #tpu.memory_space<vmem>>, vector<128x128xbf16>
    %cst_69 = arith.constant dense<0.000000e+00> : vector<8x128xf32>
    %118 = tpu.matmul %116, %117, %cst_69 {dimension_numbers = #tpu.dot_dimension_numbers<[1], [0], [0], [1], [0, 0, 1, 1], [], []>} : vector<8x128xbf16>, vector<128x128xbf16>, vector<8x128xf32> -> vector<8x128xf32>
    %119 = vector.broadcast %110 : vector<1x128xf32> to vector<8x128xf32>
    %120 = arith.addf %118, %119 : vector<8x128xf32>
    %121 = vector.extract_strided_slice %115 {offsets = [0, 0], sizes = [8, 8], strides = [1, 1]} : vector<8x128xf32> to vector<8x8xf32>
    %c0_70 = arith.constant 0 : index
    %c0_71 = arith.constant 0 : index
    %122 = vector.load %arg6[%c0_70, %c0_71] : memref<16x8xf32, #tpu.memory_space<vmem>>, vector<8x8xf32>
    tpu.vector_store %arg6[%c0_70, %c0_71], %121 {strides = array<i32>} : memref<16x8xf32, #tpu.memory_space<vmem>>, vector<8x8xf32>,
    %123 = vector.extract_strided_slice %120 {offsets = [0, 0], sizes = [8, 8], strides = [1, 1]} : vector<8x128xf32> to vector<8x8xf32>
    %c8_72 = arith.constant 8 : index
    %c0_73 = arith.constant 0 : index
    %124 = vector.load %arg6[%c8_72, %c0_73] : memref<16x8xf32, #tpu.memory_space<vmem>>, vector<8x8xf32>
    tpu.vector_store %arg6[%c8_72, %c0_73], %123 {strides = array<i32>} : memref<16x8xf32, #tpu.memory_space<vmem>>, vector<8x8xf32>,
    return
  }
  func.func @transform_0(%arg0: i32) -> (i32, i32) {
    %c0_i32 = arith.constant 0 : i32
    %c0_i32_0 = arith.constant 0 : i32
    return %arg0, %c0_i32 : i32, i32
  }
  func.func @transform_1(%arg0: i32) -> (i32, i32) {
    %c0_i32 = arith.constant 0 : i32
    %c0_i32_0 = arith.constant 0 : i32
    %c0_i32_1 = arith.constant 0 : i32
    return %c0_i32, %c0_i32_0 : i32, i32
  }
  func.func @transform_2(%arg0: i32) -> (i32, i32, i32) {
    %c0_i32 = arith.constant 0 : i32
    %c0_i32_0 = arith.constant 0 : i32
    %c0_i32_1 = arith.constant 0 : i32
    %c0_i32_2 = arith.constant 0 : i32
    return %c0_i32, %c0_i32_0, %c0_i32_1 : i32, i32, i32
  }
  func.func @transform_3(%arg0: i32) -> (i32, i32) {
    %c0_i32 = arith.constant 0 : i32
    %c0_i32_0 = arith.constant 0 : i32
    %c0_i32_1 = arith.constant 0 : i32
    return %c0_i32, %c0_i32_0 : i32, i32
  }
  func.func @transform_4(%arg0: i32) -> (i32, i32) {
    %c0_i32 = arith.constant 0 : i32
    %c0_i32_0 = arith.constant 0 : i32
    %c0_i32_1 = arith.constant 0 : i32
    return %c0_i32, %c0_i32_0 : i32, i32
  }
  func.func @transform_5(%arg0: i32) -> (i32, i32) {
    %c0_i32 = arith.constant 0 : i32
    %c0_i32_0 = arith.constant 0 : i32
    return %arg0, %c0_i32 : i32, i32
  }
}

</mosaic_0001>

<bundles_post_ra>
// kernel: net_forward.1
= control target key start
LH: loop header
LB: loop body
LE: loop exit
PB: predicated region body
PF: predicated region fallthrough
CT: control target
= control target key end

     0   :  { %v1380_v0 = vmov 0.0   ;;  %vm1381_vm0 = vmmov 0   ;;  %vm44_vm1 = vcmask 261120   ;;  %vm919_vm12 = vcmask 64512   ;;  %s1676_s1 = inlined_call_operand.vmem [shape: bf16[32,128], index: 1, kind: input, shape index: {}]   ;;  %s1677_s0 = inlined_call_operand.vmem [shape: bf16[16,32], index: 0, kind: input, shape index: {}]   ;;  %s1678_s2 = inlined_call_operand.vmem [shape: bf16[4,128,128], index: 2, kind: input, shape index: {}]   ;;  %s1679_s4 = inlined_call_operand.vmem [shape: f32[6,128], index: 4, kind: input, shape index: {}]   ;;  %s1680_s3 = inlined_call_operand.vmem [shape: bf16[128,128], index: 3, kind: input, shape index: {}]   ;;  %s1681_s5 = inlined_call_operand.vmem [shape: f32[16,8], index: 5, kind: output, shape index: {}]  }
   0x1   :  { %1120 = vmatprep.subr.bf16.mxu0 %v1380_v0  ;;  %1128 = vmatprep.subr.bf16.mxu1 %v1380_v0  ;;  %v1338_v1 = vld [vmem:[%s1676_s1 + $0x8] sm:$0xff]   ;;  %v1339_v2 = vld [vmem:[%s1676_s1] sm:$0xff]   ;;  %v1340_v5 = vld [vmem:[%s1678_s2 + $0x38] sm:$0xff]  }
   0x2   :  { %1124 = vmatprep.mubr.msk.bf16.mxu0 %vm1381_vm0, %v1380_v0  ;;  %1132 = vmatprep.mubr.msk.bf16.mxu1 %vm1381_vm0, %v1380_v0  ;;  %v21_v3 = vld [vmem:[%s1677_s0] sm:$0xf]  ;;  %v22_v4 = vld [vmem:[%s1677_s0 + $0x4] sm:$0xf]  ;;  %v1341_v6 = vld [vmem:[%s1678_s2 + $0x30] sm:$0xff]  }
   0x3   :  { %1121 = vmatpush3.bf16.msra.mxu0 %v1338_v1  ;;  %1129 = vmatpush3.bf16.msra.mxu1 %v1338_v1  ;;  %v1342_v7 = vld [vmem:[%s1678_s2 + $0x28] sm:$0xff]   ;;  %v1343_v8 = vld [vmem:[%s1678_s2 + $0x20] sm:$0xff]   ;;  %v1344_v9 = vld [vmem:[%s1678_s2 + $0x18] sm:$0xff]  }
   0x4   :  { %1122 = vmatprep.subr.bf16.mxu0 %v1380_v0  ;;  %1130 = vmatprep.subr.bf16.mxu1 %v1380_v0  ;;  %v1345_v10 = vld [vmem:[%s1678_s2 + $0x10] sm:$0xff]   ;;  %v1346_v11 = vld [vmem:[%s1678_s2 + $0x8] sm:$0xff]   ;;  %v1347_v12 = vld [vmem:[%s1678_s2] sm:$0xff]  }
   0x5   :  { %v926_v13 = vld [vmem:[%s1679_s4] ss:$0 sm:$0xff]  ;;  %v1348_v26 = vld [vmem:[%s1678_s2 + $0x78] sm:$0xff]   ;;  %v1349_v31 = vld [vmem:[%s1678_s2 + $0x70] sm:$0xff]  }
   0x6   :  { %v1350_v32 = vld [vmem:[%s1678_s2 + $0x68] sm:$0xff]   ;;  %v1351_v33 = vld [vmem:[%s1678_s2 + $0x60] sm:$0xff]   ;;  %v1352_v34 = vld [vmem:[%s1678_s2 + $0x58] sm:$0xff]  }
   0x7   :  { %1123 = vmatpush3.bf16.msra.mxu0 %v1339_v2  ;;  %1131 = vmatpush3.bf16.msra.mxu1 %v1339_v2  ;;  %v1353_v35 = vld [vmem:[%s1678_s2 + $0x50] sm:$0xff]   ;;  %v1354_v36 = vld [vmem:[%s1678_s2 + $0x48] sm:$0xff]   ;;  %v1355_v37 = vld [vmem:[%s1678_s2 + $0x40] sm:$0xff]  }
   0x8   :  { %1136 = vmatprep.subr.bf16.mxu0 %v1380_v0  ;;  %1156 = vmatprep.subr.bf16.mxu1 %v1380_v0  ;;  %v931_v38 = vld [vmem:[%s1679_s4 + $0x1] ss:$0 sm:$0xff]  ;;  %v1356_v51 = vld [vmem:[%s1678_s2 + $0xb8] sm:$0xff]   ;;  %v1357_v56 = vld [vmem:[%s1678_s2 + $0xb0] sm:$0xff]  }
   0x9   :  { %v1358_v57 = vld [vmem:[%s1678_s2 + $0xa8] sm:$0xff]   ;;  %v1359_v58 = vld [vmem:[%s1678_s2 + $0xa0] sm:$0xff]   ;;  %v1360_v59 = vld [vmem:[%s1678_s2 + $0x98] sm:$0xff]  }
   0xa   :  { %1125 = vmatmul.mubr.msk.bf16.vlgmr.msra.gmra.mxu0 %vm44_vm1, %v21_v3  ;;  %1133 = vmatmul.mubr.msk.bf16.vlgmr.msra.gmra.mxu1 %vm44_vm1, %v22_v4  ;;  %v1361_v60 = vld [vmem:[%s1678_s2 + $0x90] sm:$0xff]   ;;  %v1362_v61 = vld [vmem:[%s1678_s2 + $0x88] sm:$0xff]   ;;  %v1363_v62 = vld [vmem:[%s1678_s2 + $0x80] sm:$0xff]  }
   0xb   :  { %1137 = vmatpush3.bf16.msra.mxu0 %v1340_v5  ;;  %1157 = vmatpush3.bf16.msra.mxu1 %v1340_v5  ;;  %v956_v63 = vld [vmem:[%s1679_s4 + $0x2] ss:$0 sm:$0xff] }
   0xc   :  { %1138 = vmatprep.subr.bf16.mxu0 %v1380_v0  ;;  %1158 = vmatprep.subr.bf16.mxu1 %v1380_v0 }
   0xd   :  { %1152 = vmatprep.mubr.msk.bf16.mxu0 %vm1381_vm0, %v1380_v0  ;;  %1172 = vmatprep.mubr.msk.bf16.mxu1 %vm1381_vm0, %v1380_v0 }
   0xf   :  { %1139 = vmatpush3.bf16.msra.mxu0 %v1341_v6  ;;  %1159 = vmatpush3.bf16.msra.mxu1 %v1341_v6 }
  0x10   :  { %1140 = vmatprep.subr.bf16.mxu0 %v1380_v0  ;;  %1160 = vmatprep.subr.bf16.mxu1 %v1380_v0 }
  0x13   :  { %1141 = vmatpush3.bf16.msra.mxu0 %v1342_v7  ;;  %1161 = vmatpush3.bf16.msra.mxu1 %v1342_v7 }
  0x14   :  { %1142 = vmatprep.subr.bf16.mxu0 %v1380_v0  ;;  %1162 = vmatprep.subr.bf16.mxu1 %v1380_v0 }
  0x17   :  { %1143 = vmatpush3.bf16.msra.mxu0 %v1343_v8  ;;  %1163 = vmatpush3.bf16.msra.mxu1 %v1343_v8 }
  0x18   :  { %1144 = vmatprep.subr.bf16.mxu0 %v1380_v0  ;;  %1164 = vmatprep.subr.bf16.mxu1 %v1380_v0 }
  0x1b   :  { %1145 = vmatpush3.bf16.msra.mxu0 %v1344_v9  ;;  %1165 = vmatpush3.bf16.msra.mxu1 %v1344_v9 }
  0x1c   :  { %1146 = vmatprep.subr.bf16.mxu0 %v1380_v0  ;;  %1166 = vmatprep.subr.bf16.mxu1 %v1380_v0 }
  0x1f   :  { %1147 = vmatpush3.bf16.msra.mxu0 %v1345_v10  ;;  %1167 = vmatpush3.bf16.msra.mxu1 %v1345_v10 }
  0x20   :  { %1148 = vmatprep.subr.bf16.mxu0 %v1380_v0  ;;  %1168 = vmatprep.subr.bf16.mxu1 %v1380_v0 }
  0x23   :  { %1149 = vmatpush3.bf16.msra.mxu0 %v1346_v11  ;;  %1169 = vmatpush3.bf16.msra.mxu1 %v1346_v11 }
  0x24   :  { %1150 = vmatprep.subr.bf16.mxu0 %v1380_v0  ;;  %1170 = vmatprep.subr.bf16.mxu1 %v1380_v0 }
  0x27   :  { %1151 = vmatpush3.bf16.msra.mxu0 %v1347_v12  ;;  %1171 = vmatpush3.bf16.msra.mxu1 %v1347_v12 }
  0x28   :  { %1176 = vmatprep.subr.bf16.mxu0 %v1380_v0  ;;  %1196 = vmatprep.subr.bf16.mxu1 %v1380_v0 }
  0xca   :  { %v82_v14 = vpop.f32.mrf.mxu0  ;;  %v128_v15 = vpop.f32.mrf.mxu1 }
  0xcb   :  { %v83_v16 = vadd.f32 %v926_v13, %v82_v14  ;;  %v129_v17 = vadd.f32 %v926_v13, %v128_v15  ;;  %v1364_v13 = vld [vmem:[%s1678_s2 + $0xf8] sm:$0xff]  }
  0xcc   :  { %v1126_v18 = vpop.f32.mrf.mxu0  ;;  %v1134_v19 = vpop.f32.mrf.mxu1 }
  0xcd   :  { %vm88_vm2 = vcmp.gt.f32.partialorder %v83_v16, 0.0  ;;  %v89_v20 = vmul.f32 0.01, %v83_v16  ;;  %vm134_vm3 = vcmp.gt.f32.partialorder %v129_v17, 0.0  ;;  %v135_v21 = vmul.f32 0.01, %v129_v17 }
  0xce   :  { %v85_v22 = vpop.f32.mrf.mxu0  ;;  %v131_v23 = vpop.f32.mrf.mxu1  ;;  %v1365_v18 = vld [vmem:[%s1678_s2 + $0xf0] sm:$0xff]   ;;  %v1366_v19 = vld [vmem:[%s1678_s2 + $0xe8] sm:$0xff]  }
  0xcf   :  { %v90_v24 = vsel %vm88_vm2, %v83_v16, %v89_v20  ;;  %v136_v25 = vsel %vm134_vm3, %v129_v17, %v135_v21  ;;  %v1367_v20 = vld [vmem:[%s1678_s2 + $0xe0] sm:$0xff]   ;;  %v1368_v21 = vld [vmem:[%s1678_s2 + $0xd8] sm:$0xff]   ;;  %v1369_v22 = vld [vmem:[%s1678_s2 + $0xd0] sm:$0xff]  }
  0xd0   :  { %v153_v27 = vpack.c.bf16 %v90_v24, %v90_v24  ;;  %v250_v28 = vpack.c.bf16 %v136_v25, %v136_v25  ;;  %v1127_v29 = vpop.f32.mrf.mxu0  ;;  %v1135_v30 = vpop.f32.mrf.mxu1  ;;  %v1370_v23 = vld [vmem:[%s1678_s2 + $0xc8] sm:$0xff]   ;;  %v1371_v24 = vld [vmem:[%s1678_s2 + $0xc0] sm:$0xff]  }
  0xd1   :  { %v981_v25 = vld [vmem:[%s1679_s4 + $0x3] ss:$0 sm:$0xff] }
  0xd2   :  { %1153 = vmatmul.mubr.bf16.vlgmr.msra.gmra.mxu0 %v153_v27  ;;  %1173 = vmatmul.mubr.bf16.vlgmr.msra.gmra.mxu1 %v250_v28 }
  0xd3   :  { %1177 = vmatpush3.bf16.msra.mxu0 %v1348_v26  ;;  %1197 = vmatpush3.bf16.msra.mxu1 %v1348_v26 }
  0xd4   :  { %1178 = vmatprep.subr.bf16.mxu0 %v1380_v0  ;;  %1198 = vmatprep.subr.bf16.mxu1 %v1380_v0 }
  0xd5   :  { %1192 = vmatprep.mubr.msk.bf16.mxu0 %vm1381_vm0, %v1380_v0  ;;  %1212 = vmatprep.mubr.msk.bf16.mxu1 %vm1381_vm0, %v1380_v0 }
  0xd7   :  { %1179 = vmatpush3.bf16.msra.mxu0 %v1349_v31  ;;  %1199 = vmatpush3.bf16.msra.mxu1 %v1349_v31 }
  0xd8   :  { %1180 = vmatprep.subr.bf16.mxu0 %v1380_v0  ;;  %1200 = vmatprep.subr.bf16.mxu1 %v1380_v0 }
  0xdb   :  { %1181 = vmatpush3.bf16.msra.mxu0 %v1350_v32  ;;  %1201 = vmatpush3.bf16.msra.mxu1 %v1350_v32 }
  0xdc   :  { %1182 = vmatprep.subr.bf16.mxu0 %v1380_v0  ;;  %1202 = vmatprep.subr.bf16.mxu1 %v1380_v0 }
  0xdf   :  { %1183 = vmatpush3.bf16.msra.mxu0 %v1351_v33  ;;  %1203 = vmatpush3.bf16.msra.mxu1 %v1351_v33 }
  0xe0   :  { %1184 = vmatprep.subr.bf16.mxu0 %v1380_v0  ;;  %1204 = vmatprep.subr.bf16.mxu1 %v1380_v0 }
  0xe3   :  { %1185 = vmatpush3.bf16.msra.mxu0 %v1352_v34  ;;  %1205 = vmatpush3.bf16.msra.mxu1 %v1352_v34 }
  0xe4   :  { %1186 = vmatprep.subr.bf16.mxu0 %v1380_v0  ;;  %1206 = vmatprep.subr.bf16.mxu1 %v1380_v0 }
  0xe7   :  { %1187 = vmatpush3.bf16.msra.mxu0 %v1353_v35  ;;  %1207 = vmatpush3.bf16.msra.mxu1 %v1353_v35 }
  0xe8   :  { %1188 = vmatprep.subr.bf16.mxu0 %v1380_v0  ;;  %1208 = vmatprep.subr.bf16.mxu1 %v1380_v0 }
  0xeb   :  { %1189 = vmatpush3.bf16.msra.mxu0 %v1354_v36  ;;  %1209 = vmatpush3.bf16.msra.mxu1 %v1354_v36 }
  0xec   :  { %1190 = vmatprep.subr.bf16.mxu0 %v1380_v0  ;;  %1210 = vmatprep.subr.bf16.mxu1 %v1380_v0 }
  0xef   :  { %1191 = vmatpush3.bf16.msra.mxu0 %v1355_v37  ;;  %1211 = vmatpush3.bf16.msra.mxu1 %v1355_v37 }
  0xf0   :  { %1216 = vmatprep.subr.bf16.mxu0 %v1380_v0  ;;  %1236 = vmatprep.subr.bf16.mxu1 %v1380_v0 }
 0x192   :  { %v241_v39 = vpop.f32.mrf.mxu0  ;;  %v285_v40 = vpop.f32.mrf.mxu1 }
 0x193   :  { %v242_v41 = vadd.f32 %v931_v38, %v241_v39  ;;  %v286_v42 = vadd.f32 %v931_v38, %v285_v40  ;;  %v1372_v38 = vld [vmem:[%s1680_s3 + $0x38] sm:$0xff]  }
 0x194   :  { %v1154_v43 = vpop.f32.mrf.mxu0  ;;  %v1174_v44 = vpop.f32.mrf.mxu1 }
 0x195   :  { %vm247_vm4 = vcmp.gt.f32.partialorder %v242_v41, 0.0  ;;  %v248_v45 = vmul.f32 0.01, %v242_v41  ;;  %vm291_vm5 = vcmp.gt.f32.partialorder %v286_v42, 0.0  ;;  %v292_v46 = vmul.f32 0.01, %v286_v42 }
 0x196   :  { %v244_v47 = vpop.f32.mrf.mxu0  ;;  %v288_v48 = vpop.f32.mrf.mxu1  ;;  %v1373_v43 = vld [vmem:[%s1680_s3 + $0x30] sm:$0xff]   ;;  %v1374_v44 = vld [vmem:[%s1680_s3 + $0x28] sm:$0xff]  }
 0x197   :  { %v249_v49 = vsel %vm247_vm4, %v242_v41, %v248_v45  ;;  %v293_v50 = vsel %vm291_vm5, %v286_v42, %v292_v46  ;;  %v1375_v45 = vld [vmem:[%s1680_s3 + $0x20] sm:$0xff]   ;;  %v1376_v46 = vld [vmem:[%s1680_s3 + $0x18] sm:$0xff]   ;;  %v1377_v47 = vld [vmem:[%s1680_s3 + $0x10] sm:$0xff]  }
 0x198   :  { %v311_v52 = vpack.c.bf16 %v249_v49, %v249_v49  ;;  %v408_v53 = vpack.c.bf16 %v293_v50, %v293_v50  ;;  %v1155_v54 = vpop.f32.mrf.mxu0  ;;  %v1175_v55 = vpop.f32.mrf.mxu1  ;;  %v1378_v48 = vld [vmem:[%s1680_s3 + $0x8] sm:$0xff]   ;;  %v1379_v49 = vld [vmem:[%s1680_s3] sm:$0xff]  }
 0x199   :  { %v1006_v50 = vld [vmem:[%s1679_s4 + $0x4] ss:$0 sm:$0xff] }
 0x19a   :  { %1193 = vmatmul.mubr.bf16.vlgmr.msra.gmra.mxu0 %v311_v52  ;;  %1213 = vmatmul.mubr.bf16.vlgmr.msra.gmra.mxu1 %v408_v53 }
 0x19b   :  { %1217 = vmatpush3.bf16.msra.mxu0 %v1356_v51  ;;  %1237 = vmatpush3.bf16.msra.mxu1 %v1356_v51 }
 0x19c   :  { %1218 = vmatprep.subr.bf16.mxu0 %v1380_v0  ;;  %1238 = vmatprep.subr.bf16.mxu1 %v1380_v0 }
 0x19d   :  { %1232 = vmatprep.mubr.msk.bf16.mxu0 %vm1381_vm0, %v1380_v0  ;;  %1252 = vmatprep.mubr.msk.bf16.mxu1 %vm1381_vm0, %v1380_v0 }
 0x19f   :  { %1219 = vmatpush3.bf16.msra.mxu0 %v1357_v56  ;;  %1239 = vmatpush3.bf16.msra.mxu1 %v1357_v56 }
 0x1a0   :  { %1220 = vmatprep.subr.bf16.mxu0 %v1380_v0  ;;  %1240 = vmatprep.subr.bf16.mxu1 %v1380_v0 }
 0x1a3   :  { %1221 = vmatpush3.bf16.msra.mxu0 %v1358_v57  ;;  %1241 = vmatpush3.bf16.msra.mxu1 %v1358_v57 }
 0x1a4   :  { %1222 = vmatprep.subr.bf16.mxu0 %v1380_v0  ;;  %1242 = vmatprep.subr.bf16.mxu1 %v1380_v0 }
 0x1a7   :  { %1223 = vmatpush3.bf16.msra.mxu0 %v1359_v58  ;;  %1243 = vmatpush3.bf16.msra.mxu1 %v1359_v58 }
 0x1a8   :  { %1224 = vmatprep.subr.bf16.mxu0 %v1380_v0  ;;  %1244 = vmatprep.subr.bf16.mxu1 %v1380_v0 }
 0x1ab   :  { %1225 = vmatpush3.bf16.msra.mxu0 %v1360_v59  ;;  %1245 = vmatpush3.bf16.msra.mxu1 %v1360_v59 }
 0x1ac   :  { %1226 = vmatprep.subr.bf16.mxu0 %v1380_v0  ;;  %1246 = vmatprep.subr.bf16.mxu1 %v1380_v0 }
 0x1af   :  { %1227 = vmatpush3.bf16.msra.mxu0 %v1361_v60  ;;  %1247 = vmatpush3.bf16.msra.mxu1 %v1361_v60 }
 0x1b0   :  { %1228 = vmatprep.subr.bf16.mxu0 %v1380_v0  ;;  %1248 = vmatprep.subr.bf16.mxu1 %v1380_v0 }
 0x1b3   :  { %1229 = vmatpush3.bf16.msra.mxu0 %v1362_v61  ;;  %1249 = vmatpush3.bf16.msra.mxu1 %v1362_v61 }
 0x1b4   :  { %1230 = vmatprep.subr.bf16.mxu0 %v1380_v0  ;;  %1250 = vmatprep.subr.bf16.mxu1 %v1380_v0 }
 0x1b7   :  { %1231 = vmatpush3.bf16.msra.mxu0 %v1363_v62  ;;  %1251 = vmatpush3.bf16.msra.mxu1 %v1363_v62 }
 0x1b8   :  { %1256 = vmatprep.subr.bf16.mxu0 %v1380_v0  ;;  %1276 = vmatprep.subr.bf16.mxu1 %v1380_v0 }
 0x25a   :  { %v399_v1 = vpop.f32.mrf.mxu0  ;;  %v443_v2 = vpop.f32.mrf.mxu1 }
 0x25b   :  { %v400_v3 = vadd.f32 %v956_v63, %v399_v1  ;;  %v444_v4 = vadd.f32 %v956_v63, %v443_v2 }
 0x25c   :  { %v1194_v5 = vpop.f32.mrf.mxu0  ;;  %v1214_v6 = vpop.f32.mrf.mxu1 }
 0x25d   :  { %vm405_vm6 = vcmp.gt.f32.partialorder %v400_v3, 0.0  ;;  %v406_v7 = vmul.f32 0.01, %v400_v3  ;;  %vm449_vm7 = vcmp.gt.f32.partialorder %v444_v4, 0.0  ;;  %v450_v8 = vmul.f32 0.01, %v444_v4 }
 0x25e   :  { %v402_v9 = vpop.f32.mrf.mxu0  ;;  %v446_v10 = vpop.f32.mrf.mxu1 }
 0x25f   :  { %v407_v11 = vsel %vm405_vm6, %v400_v3, %v406_v7  ;;  %v451_v12 = vsel %vm449_vm7, %v444_v4, %v450_v8  ;;  %v1015_v3 = vld [vmem:[%s1679_s4 + $0x5] ss:$0 sm:$0xff] }
 0x260   :  { %v469_v14 = vpack.c.bf16 %v407_v11, %v407_v11  ;;  %v566_v15 = vpack.c.bf16 %v451_v12, %v451_v12  ;;  %v1195_v16 = vpop.f32.mrf.mxu0  ;;  %v1215_v17 = vpop.f32.mrf.mxu1 }
 0x262   :  { %1233 = vmatmul.mubr.bf16.vlgmr.msra.gmra.mxu0 %v469_v14  ;;  %1253 = vmatmul.mubr.bf16.vlgmr.msra.gmra.mxu1 %v566_v15 }
 0x263   :  { %1257 = vmatpush3.bf16.msra.mxu0 %v1364_v13  ;;  %1277 = vmatpush3.bf16.msra.mxu1 %v1364_v13 }
 0x264   :  { %1258 = vmatprep.subr.bf16.mxu0 %v1380_v0  ;;  %1278 = vmatprep.subr.bf16.mxu1 %v1380_v0 }
 0x265   :  { %1272 = vmatprep.mubr.msk.bf16.mxu0 %vm1381_vm0, %v1380_v0  ;;  %1292 = vmatprep.mubr.msk.bf16.mxu1 %vm1381_vm0, %v1380_v0 }
 0x267   :  { %1259 = vmatpush3.bf16.msra.mxu0 %v1365_v18  ;;  %1279 = vmatpush3.bf16.msra.mxu1 %v1365_v18 }
 0x268   :  { %1260 = vmatprep.subr.bf16.mxu0 %v1380_v0  ;;  %1280 = vmatprep.subr.bf16.mxu1 %v1380_v0 }
 0x26b   :  { %1261 = vmatpush3.bf16.msra.mxu0 %v1366_v19  ;;  %1281 = vmatpush3.bf16.msra.mxu1 %v1366_v19 }
 0x26c   :  { %1262 = vmatprep.subr.bf16.mxu0 %v1380_v0  ;;  %1282 = vmatprep.subr.bf16.mxu1 %v1380_v0 }
 0x26f   :  { %1263 = vmatpush3.bf16.msra.mxu0 %v1367_v20  ;;  %1283 = vmatpush3.bf16.msra.mxu1 %v1367_v20 }
 0x270   :  { %1264 = vmatprep.subr.bf16.mxu0 %v1380_v0  ;;  %1284 = vmatprep.subr.bf16.mxu1 %v1380_v0 }
 0x273   :  { %1265 = vmatpush3.bf16.msra.mxu0 %v1368_v21  ;;  %1285 = vmatpush3.bf16.msra.mxu1 %v1368_v21 }
 0x274   :  { %1266 = vmatprep.subr.bf16.mxu0 %v1380_v0  ;;  %1286 = vmatprep.subr.bf16.mxu1 %v1380_v0 }
 0x277   :  { %1267 = vmatpush3.bf16.msra.mxu0 %v1369_v22  ;;  %1287 = vmatpush3.bf16.msra.mxu1 %v1369_v22 }
 0x278   :  { %1268 = vmatprep.subr.bf16.mxu0 %v1380_v0  ;;  %1288 = vmatprep.subr.bf16.mxu1 %v1380_v0 }
 0x27b   :  { %1269 = vmatpush3.bf16.msra.mxu0 %v1370_v23  ;;  %1289 = vmatpush3.bf16.msra.mxu1 %v1370_v23 }
 0x27c   :  { %1270 = vmatprep.subr.bf16.mxu0 %v1380_v0  ;;  %1290 = vmatprep.subr.bf16.mxu1 %v1380_v0 }
 0x27f   :  { %1271 = vmatpush3.bf16.msra.mxu0 %v1371_v24  ;;  %1291 = vmatpush3.bf16.msra.mxu1 %v1371_v24 }
 0x280   :  { %1296 = vmatprep.subr.bf16.mxu0 %v1380_v0  ;;  %1316 = vmatprep.subr.bf16.mxu1 %v1380_v0 }
 0x322   :  { %v557_v26 = vpop.f32.mrf.mxu0  ;;  %v601_v27 = vpop.f32.mrf.mxu1 }
 0x323   :  { %v558_v28 = vadd.f32 %v981_v25, %v557_v26  ;;  %v602_v29 = vadd.f32 %v981_v25, %v601_v27 }
 0x324   :  { %v1234_v30 = vpop.f32.mrf.mxu0  ;;  %v1254_v31 = vpop.f32.mrf.mxu1 }
 0x325   :  { %vm563_vm8 = vcmp.gt.f32.partialorder %v558_v28, 0.0  ;;  %v564_v32 = vmul.f32 0.01, %v558_v28  ;;  %vm607_vm9 = vcmp.gt.f32.partialorder %v602_v29, 0.0  ;;  %v608_v33 = vmul.f32 0.01, %v602_v29 }
 0x326   :  { %v560_v34 = vpop.f32.mrf.mxu0  ;;  %v604_v35 = vpop.f32.mrf.mxu1 }
 0x327   :  { %v565_v36 = vsel %vm563_vm8, %v558_v28, %v564_v32  ;;  %v609_v37 = vsel %vm607_vm9, %v602_v29, %v608_v33 }
 0x328   :  { %v627_v39 = vpack.c.bf16 %v565_v36, %v565_v36  ;;  %v724_v40 = vpack.c.bf16 %v609_v37, %v609_v37  ;;  %v1235_v41 = vpop.f32.mrf.mxu0  ;;  %v1255_v42 = vpop.f32.mrf.mxu1 }
 0x32a   :  { %1273 = vmatmul.mubr.bf16.vlgmr.msra.gmra.mxu0 %v627_v39  ;;  %1293 = vmatmul.mubr.bf16.vlgmr.msra.gmra.mxu1 %v724_v40 }
 0x32b   :  { %1297 = vmatpush3.bf16.msra.mxu0 %v1372_v38  ;;  %1317 = vmatpush3.bf16.msra.mxu1 %v1372_v38 }
 0x32c   :  { %1298 = vmatprep.subr.bf16.mxu0 %v1380_v0  ;;  %1318 = vmatprep.subr.bf16.mxu1 %v1380_v0 }
 0x32d   :  { %1312 = vmatprep.mubr.msk.bf16.mxu0 %vm1381_vm0, %v1380_v0  ;;  %1332 = vmatprep.mubr.msk.bf16.mxu1 %vm1381_vm0, %v1380_v0 }
 0x32f   :  { %1299 = vmatpush3.bf16.msra.mxu0 %v1373_v43  ;;  %1319 = vmatpush3.bf16.msra.mxu1 %v1373_v43 }
 0x330   :  { %1300 = vmatprep.subr.bf16.mxu0 %v1380_v0  ;;  %1320 = vmatprep.subr.bf16.mxu1 %v1380_v0 }
 0x333   :  { %1301 = vmatpush3.bf16.msra.mxu0 %v1374_v44  ;;  %1321 = vmatpush3.bf16.msra.mxu1 %v1374_v44 }
 0x334   :  { %1302 = vmatprep.subr.bf16.mxu0 %v1380_v0  ;;  %1322 = vmatprep.subr.bf16.mxu1 %v1380_v0 }
 0x337   :  { %1303 = vmatpush3.bf16.msra.mxu0 %v1375_v45  ;;  %1323 = vmatpush3.bf16.msra.mxu1 %v1375_v45 }
 0x338   :  { %1304 = vmatprep.subr.bf16.mxu0 %v1380_v0  ;;  %1324 = vmatprep.subr.bf16.mxu1 %v1380_v0 }
 0x33b   :  { %1305 = vmatpush3.bf16.msra.mxu0 %v1376_v46  ;;  %1325 = vmatpush3.bf16.msra.mxu1 %v1376_v46 }
 0x33c   :  { %1306 = vmatprep.subr.bf16.mxu0 %v1380_v0  ;;  %1326 = vmatprep.subr.bf16.mxu1 %v1380_v0 }
 0x33f   :  { %1307 = vmatpush3.bf16.msra.mxu0 %v1377_v47  ;;  %1327 = vmatpush3.bf16.msra.mxu1 %v1377_v47 }
 0x340   :  { %1308 = vmatprep.subr.bf16.mxu0 %v1380_v0  ;;  %1328 = vmatprep.subr.bf16.mxu1 %v1380_v0 }
 0x343   :  { %1309 = vmatpush3.bf16.msra.mxu0 %v1378_v48  ;;  %1329 = vmatpush3.bf16.msra.mxu1 %v1378_v48 }
 0x344   :  { %1310 = vmatprep.subr.bf16.mxu0 %v1380_v0  ;;  %1330 = vmatprep.subr.bf16.mxu1 %v1380_v0 }
 0x347   :  { %1311 = vmatpush3.bf16.msra.mxu0 %v1379_v49  ;;  %1331 = vmatpush3.bf16.msra.mxu1 %v1379_v49 }
 0x3ea   :  { %v715_v51 = vpop.f32.mrf.mxu0  ;;  %v759_v52 = vpop.f32.mrf.mxu1 }
 0x3eb   :  { %v716_v53 = vadd.f32 %v1006_v50, %v715_v51  ;;  %v760_v54 = vadd.f32 %v1006_v50, %v759_v52 }
 0x3ec   :  { %v1274_v55 = vpop.f32.mrf.mxu0  ;;  %v1294_v56 = vpop.f32.mrf.mxu1 }
 0x3ed   :  { %vm721_vm10 = vcmp.gt.f32.partialorder %v716_v53, 0.0  ;;  %v722_v57 = vmul.f32 0.01, %v716_v53  ;;  %vm765_vm11 = vcmp.gt.f32.partialorder %v760_v54, 0.0  ;;  %v766_v0 = vmul.f32 0.01, %v760_v54 }
 0x3ee   :  { %v718_v58 = vpop.f32.mrf.mxu0  ;;  %v762_v59 = vpop.f32.mrf.mxu1 }
 0x3ef   :  { %v723_v60 = vsel %vm721_vm10, %v716_v53, %v722_v57  ;;  %v767_v61 = vsel %vm765_vm11, %v760_v54, %v766_v0 }
 0x3f0   :  { %v769_v62 = vpack.c.bf16 %v723_v60, %v723_v60  ;;  %v878_v63 = vpack.c.bf16 %v767_v61, %v767_v61  ;;  %v1275_v1 = vpop.f32.mrf.mxu0  ;;  %v1295_v2 = vpop.f32.mrf.mxu1 }
 0x3f2   :  { %1313 = vmatmul.mubr.bf16.vlgmr.msra.gmra.mxu0 %v769_v62  ;;  %1333 = vmatmul.mubr.bf16.vlgmr.msra.gmra.mxu1 %v878_v63 }
 0x4b2   :  { %v872_v4 = vpop.f32.mrf.mxu0  ;;  %v913_v5 = vpop.f32.mrf.mxu1 }
 0x4b3   :  { %v873_v6 = vadd.f32 %v1015_v3, %v872_v4  ;;  %v914_v7 = vadd.f32 %v1015_v3, %v913_v5 }
 0x4b4   :  { %v1314_v8 = vpop.f32.mrf.mxu0  ;;  %v1334_v9 = vpop.f32.mrf.mxu1 }
 0x4b5   :  { %920 = vst.msk [vmem:[%s1681_s5] sm:$0xff] %vm919_vm12, %v873_v6  ;;  %921 = vst.msk [vmem:[%s1681_s5 + $0x8] sm:$0xff] %vm919_vm12, %v914_v7 }
 0x4b6   :  { %v875_v10 = vpop.f32.mrf.mxu0  ;;  %v916_v11 = vpop.f32.mrf.mxu1 }
 0x4b8   :  { %v1315_v12 = vpop.f32.mrf.mxu0  ;;  %v1335_v13 = vpop.f32.mrf.mxu1 }

</bundles_post_ra>
